<compile_context>
chip_gen: v7x
topology: tpu7x:2x2x1
jax: 0.10.0
libtpu: 0.0.40
codegen_flags: <defaults>
</compile_context>

<pallas_src>
import functools

import jax
import jax.numpy as jnp
from jax.experimental import pallas as pl
from jax.experimental.pallas import tpu as pltpu


def _round_up(x, m):
    return ((x + m - 1) // m) * m


def _mlp_kernel(x_ref,
                w1_ref, b1_ref,
                w2_ref, b2_ref,
                w3_ref, b3_ref,
                w4_ref, b4_ref,
                w5_ref, b5_ref,
                out_ref):
    """One (TM, input_len) batch tile: 5 matmuls + ReLU + lane-dense softmax."""
    # bf16 operands into the MXU, f32 accumulation; bias-add/ReLU in f32,
    # then a single cast back to bf16 for the next layer's MXU operand.
    h = jnp.dot(x_ref[...].astype(jnp.bfloat16), w1_ref[...],
                preferred_element_type=jnp.float32) + b1_ref[...]
    h = jnp.maximum(h, 0.0).astype(jnp.bfloat16)

    h = jnp.dot(h, w2_ref[...], preferred_element_type=jnp.float32) + b2_ref[...]
    h = jnp.maximum(h, 0.0).astype(jnp.bfloat16)

    h = jnp.dot(h, w3_ref[...], preferred_element_type=jnp.float32) + b3_ref[...]
    h = jnp.maximum(h, 0.0).astype(jnp.bfloat16)

    h = jnp.dot(h, w4_ref[...], preferred_element_type=jnp.float32) + b4_ref[...]
    h = jnp.maximum(h, 0.0).astype(jnp.bfloat16)

    # Last layer's output dim is padded to a multiple of 128 (lane-dense).
    # Padded columns have w5 == 0 and b5 == -1e30, so exp() of them is 0 and
    # the softmax over the padded slab equals the softmax over real classes.
    logits = jnp.dot(h, w5_ref[...],
                     preferred_element_type=jnp.float32) + b5_ref[...]

    m = jnp.max(logits, axis=-1, keepdims=True)
    e = jnp.exp(logits - m)
    denom = jnp.sum(e, axis=-1, keepdims=True)
    out_ref[...] = (e * pl.reciprocal(denom, approx=True)).astype(out_ref.dtype)


def prepare_params(params):
    """One-time (outside jit) prep: bf16 weight cast + last-layer lane padding.

    params = ((w1,b1),...,(w5,b5)) with wi: (in, out) f32, bi: (1, out) f32.
    Returns the same structure with bf16 weights, f32 biases, and the last
    layer padded so its output dim is a multiple of 128.
    """
    prepped = []
    last = len(params) - 1
    for i, (w, b) in enumerate(params):
        w = jnp.asarray(w)
        b = jnp.asarray(b).reshape(1, -1)
        if i == last:
            out_dim = w.shape[1]
            padded_n = _round_up(out_dim, 128)
            if padded_n != out_dim:
                pad = padded_n - out_dim
                w = jnp.pad(w, ((0, 0), (0, pad)))
                # Large-but-finite negative (not -inf): padded logits exp to 0
                # after the max-subtract without risking inf/NaN.
                b = jnp.pad(b, ((0, 0), (0, pad)), constant_values=-1e30)
        prepped.append((w.astype(jnp.bfloat16), b.astype(jnp.float32)))
    return tuple(prepped)


@functools.partial(jax.jit, static_argnames=("n_classes", "block_m"))
def module2_forward(x, prepped_params, *, n_classes, block_m=1024):
    """Forward pass. prepped_params must come from prepare_params()."""
    batch, input_len = x.shape
    padded_classes = prepped_params[-1][0].shape[1]   # multiple of 128

    # --- Batch tiling -------------------------------------------------------
    # Pad the batch only to a multiple of 8 (sublane), then pick a tile that
    # divides it.  Keep >= 2 grid steps when there is enough work so the
    # "parallel" batch axis can be sharded across both v7x TensorCores.
    padded8 = _round_up(batch, 8)
    if padded8 <= block_m:
        n_steps = 2 if padded8 >= 16 else 1
    else:
        n_steps = max(2, pl.cdiv(padded8, block_m))
    tm = _round_up(pl.cdiv(padded8, n_steps), 8)
    padded = tm * n_steps                              # < padded8 + 8*n_steps
    x_p = x if padded == batch else jnp.pad(x, ((0, padded - batch), (0, 0)))

    # --- Specs: moving x/out blocks, VMEM-resident weights/biases -----------
    flat_inputs = [x_p]
    in_specs = [pl.BlockSpec((tm, input_len), lambda i: (i, 0))]
    weight_bytes = 0
    for w, b in prepped_params:
        flat_inputs += [w, b]
        in_specs += [pl.BlockSpec(w.shape, lambda i: (0, 0)),   # constant index
                     pl.BlockSpec(b.shape, lambda i: (0, 0))]   # => stays in VMEM
        weight_bytes += w.size * w.dtype.itemsize + b.size * b.dtype.itemsize

    dims = [input_len] + [w.shape[1] for w, _ in prepped_params]
    flops = 2 * padded * sum(dims[i] * dims[i + 1] for i in range(len(dims) - 1))
    bytes_accessed = x_p.size * 4 + padded * padded_classes * 4 + weight_bytes
    cost = pl.CostEstimate(flops=flops,
                           transcendentals=padded * padded_classes,
                           bytes_accessed=bytes_accessed)

    out = pl.pallas_call(
        _mlp_kernel,
        out_shape=jax.ShapeDtypeStruct((padded, padded_classes), jnp.float32),
        grid=(n_steps,),
        in_specs=in_specs,
        out_specs=pl.BlockSpec((tm, padded_classes), lambda i: (i, 0)),
        compiler_params=pltpu.CompilerParams(
            dimension_semantics=("parallel",)),   # megacore-shard batch axis
        cost_estimate=cost,
    )(*flat_inputs)

    return out[:batch, :n_classes]


def init_params(key, input_len, n_classes):
    """Deterministic init mimicking torch.nn.Linear (uniform +-1/sqrt(fan_in))."""
    dims = [input_len, 512, 256, 128, 64, n_classes]
    params = []
    for i in range(5):
        fan_in, fan_out = dims[i], dims[i + 1]
        key, kw, kb = jax.random.split(key, 3)
        bound = 1.0 / jnp.sqrt(float(fan_in))
        # Stored as (in, out) so the kernel computes x @ W + b.
        w = jax.random.uniform(kw, (fan_in, fan_out), jnp.float32, -bound, bound)
        b = jax.random.uniform(kb, (1, fan_out), jnp.float32, -bound, bound)
        params.append((w, b))
    return params


def _reference_forward(x, params):
    h = x
    for i, (w, b) in enumerate(params):
        h = h @ w + b
        if i < 4:
            h = jnp.maximum(h, 0.0)
    return jax.nn.softmax(h, axis=1)


if __name__ == "__main__":
    input_len = 32
    n_classes = 10

    key = jax.random.PRNGKey(0)
    key, kx = jax.random.split(key)
    params = init_params(key, input_len, n_classes)

    # One-time prep OUTSIDE the jitted forward (no per-call bf16 converts).
    prepped = jax.block_until_ready(prepare_params(params))

    for batch in (8, 300):   # single-tile case and multi-tile + ragged batch
        x = jax.random.normal(jax.random.fold_in(kx, batch),
                              (batch, input_len), jnp.float32)
        out = jax.block_until_ready(
            module2_forward(x, prepped, n_classes=n_classes))
        ref = _reference_forward(x, params)

        assert out.shape == (batch, n_classes)
        # bf16 matmul operands (f32 accumulate) => loosened tolerance vs f32 ref.
        assert jnp.allclose(out, ref, atol=3e-2, rtol=0.0), "mismatch vs JAX reference"
        # approx reciprocal in the softmax => row sums within ~1e-3 of 1.
        assert jnp.allclose(jnp.sum(out, axis=1), 1.0, atol=5e-3), \
            "softmax rows must sum to ~1"

    print("KERNEL_OK")
</pallas_src>

<mosaic_0001>
module attributes {stable_mosaic.version = 11 : i64} {
  func.func @_mlp_kernel(%arg0: i32, %arg1: memref<8x32xf32, #tpu.memory_space<vmem>>, %arg2: memref<32x512xbf16, #tpu.memory_space<vmem>>, %arg3: memref<1x512xf32, #tpu.memory_space<vmem>>, %arg4: memref<512x256xbf16, #tpu.memory_space<vmem>>, %arg5: memref<1x256xf32, #tpu.memory_space<vmem>>, %arg6: memref<256x128xbf16, #tpu.memory_space<vmem>>, %arg7: memref<1x128xf32, #tpu.memory_space<vmem>>, %arg8: memref<128x64xbf16, #tpu.memory_space<vmem>>, %arg9: memref<1x64xf32, #tpu.memory_space<vmem>>, %arg10: memref<64x128xbf16, #tpu.memory_space<vmem>>, %arg11: memref<1x128xf32, #tpu.memory_space<vmem>>, %arg12: memref<8x128xf32, #tpu.memory_space<vmem>>) attributes {dimension_semantics = [#tpu.dimension_semantics<parallel>], iteration_bounds = array<i64: 1>, scalar_prefetch = 0 : i64, scratch_operands = 0 : i64, tpu.core_type = #tpu.core_type<tc>, window_params = [{transform_indices = @transform_0, window_bounds = array<i64: 8, 32>}, {pipeline_mode = #tpu.pipeline_mode<synchronous>, transform_indices = @transform_1, window_bounds = array<i64: 32, 512>}, {pipeline_mode = #tpu.pipeline_mode<synchronous>, transform_indices = @transform_2, window_bounds = array<i64: 1, 512>}, {pipeline_mode = #tpu.pipeline_mode<synchronous>, transform_indices = @transform_3, window_bounds = array<i64: 512, 256>}, {pipeline_mode = #tpu.pipeline_mode<synchronous>, transform_indices = @transform_4, window_bounds = array<i64: 1, 256>}, {pipeline_mode = #tpu.pipeline_mode<synchronous>, transform_indices = @transform_5, window_bounds = array<i64: 256, 128>}, {pipeline_mode = #tpu.pipeline_mode<synchronous>, transform_indices = @transform_6, window_bounds = array<i64: 1, 128>}, {pipeline_mode = #tpu.pipeline_mode<synchronous>, transform_indices = @transform_7, window_bounds = array<i64: 128, 64>}, {pipeline_mode = #tpu.pipeline_mode<synchronous>, transform_indices = @transform_8, window_bounds = array<i64: 1, 64>}, {pipeline_mode = #tpu.pipeline_mode<synchronous>, transform_indices = @transform_9, window_bounds = array<i64: 64, 128>}, {pipeline_mode = #tpu.pipeline_mode<synchronous>, transform_indices = @transform_10, window_bounds = array<i64: 1, 128>}, {transform_indices = @transform_11, window_bounds = array<i64: 8, 128>}]} {
    %c0 = arith.constant 0 : index
    %c0_0 = arith.constant 0 : index
    %0 = vector.load %arg1[%c0, %c0_0] : memref<8x32xf32, #tpu.memory_space<vmem>>, vector<8x32xf32>
    %1 = arith.truncf %0 : vector<8x32xf32> to vector<8x32xbf16>
    %c0_1 = arith.constant 0 : index
    %c0_2 = arith.constant 0 : index
    %2 = vector.load %arg2[%c0_1, %c0_2] : memref<32x512xbf16, #tpu.memory_space<vmem>>, vector<32x512xbf16>
    %cst = arith.constant dense<0.000000e+00> : vector<8x512xf32>
    %3 = tpu.matmul %1, %2, %cst {dimension_numbers = #tpu.dot_dimension_numbers<[1], [0], [0], [1], [0, 0, 1, 1], [], []>} : vector<8x32xbf16>, vector<32x512xbf16>, vector<8x512xf32> -> vector<8x512xf32>
    %c0_3 = arith.constant 0 : index
    %c0_4 = arith.constant 0 : index
    %4 = vector.load %arg3[%c0_3, %c0_4] : memref<1x512xf32, #tpu.memory_space<vmem>>, vector<1x512xf32>
    %5 = vector.broadcast %4 : vector<1x512xf32> to vector<8x512xf32>
    %6 = arith.addf %3, %5 : vector<8x512xf32>
    %cst_5 = arith.constant 0.000000e+00 : f32
    %7 = vector.broadcast %cst_5 : f32 to vector<8x512xf32>
    %8 = arith.maximumf %6, %7 : vector<8x512xf32>
    %9 = arith.truncf %8 : vector<8x512xf32> to vector<8x512xbf16>
    %c0_6 = arith.constant 0 : index
    %c0_7 = arith.constant 0 : index
    %10 = vector.load %arg4[%c0_6, %c0_7] : memref<512x256xbf16, #tpu.memory_space<vmem>>, vector<512x256xbf16>
    %cst_8 = arith.constant dense<0.000000e+00> : vector<8x256xf32>
    %11 = tpu.matmul %9, %10, %cst_8 {dimension_numbers = #tpu.dot_dimension_numbers<[1], [0], [0], [1], [0, 0, 1, 1], [], []>} : vector<8x512xbf16>, vector<512x256xbf16>, vector<8x256xf32> -> vector<8x256xf32>
    %c0_9 = arith.constant 0 : index
    %c0_10 = arith.constant 0 : index
    %12 = vector.load %arg5[%c0_9, %c0_10] : memref<1x256xf32, #tpu.memory_space<vmem>>, vector<1x256xf32>
    %13 = vector.broadcast %12 : vector<1x256xf32> to vector<8x256xf32>
    %14 = arith.addf %11, %13 : vector<8x256xf32>
    %cst_11 = arith.constant 0.000000e+00 : f32
    %15 = vector.broadcast %cst_11 : f32 to vector<8x256xf32>
    %16 = arith.maximumf %14, %15 : vector<8x256xf32>
    %17 = arith.truncf %16 : vector<8x256xf32> to vector<8x256xbf16>
    %c0_12 = arith.constant 0 : index
    %c0_13 = arith.constant 0 : index
    %18 = vector.load %arg6[%c0_12, %c0_13] : memref<256x128xbf16, #tpu.memory_space<vmem>>, vector<256x128xbf16>
    %cst_14 = arith.constant dense<0.000000e+00> : vector<8x128xf32>
    %19 = tpu.matmul %17, %18, %cst_14 {dimension_numbers = #tpu.dot_dimension_numbers<[1], [0], [0], [1], [0, 0, 1, 1], [], []>} : vector<8x256xbf16>, vector<256x128xbf16>, vector<8x128xf32> -> vector<8x128xf32>
    %c0_15 = arith.constant 0 : index
    %c0_16 = arith.constant 0 : index
    %20 = vector.load %arg7[%c0_15, %c0_16] : memref<1x128xf32, #tpu.memory_space<vmem>>, vector<1x128xf32>
    %21 = vector.broadcast %20 : vector<1x128xf32> to vector<8x128xf32>
    %22 = arith.addf %19, %21 : vector<8x128xf32>
    %cst_17 = arith.constant 0.000000e+00 : f32
    %23 = vector.broadcast %cst_17 : f32 to vector<8x128xf32>
    %24 = arith.maximumf %22, %23 : vector<8x128xf32>
    %25 = arith.truncf %24 : vector<8x128xf32> to vector<8x128xbf16>
    %c0_18 = arith.constant 0 : index
    %c0_19 = arith.constant 0 : index
    %26 = vector.load %arg8[%c0_18, %c0_19] : memref<128x64xbf16, #tpu.memory_space<vmem>>, vector<128x64xbf16>
    %cst_20 = arith.constant dense<0.000000e+00> : vector<8x64xf32>
    %27 = tpu.matmul %25, %26, %cst_20 {dimension_numbers = #tpu.dot_dimension_numbers<[1], [0], [0], [1], [0, 0, 1, 1], [], []>} : vector<8x128xbf16>, vector<128x64xbf16>, vector<8x64xf32> -> vector<8x64xf32>
    %c0_21 = arith.constant 0 : index
    %c0_22 = arith.constant 0 : index
    %28 = vector.load %arg9[%c0_21, %c0_22] : memref<1x64xf32, #tpu.memory_space<vmem>>, vector<1x64xf32>
    %29 = vector.broadcast %28 : vector<1x64xf32> to vector<8x64xf32>
    %30 = arith.addf %27, %29 : vector<8x64xf32>
    %cst_23 = arith.constant 0.000000e+00 : f32
    %31 = vector.broadcast %cst_23 : f32 to vector<8x64xf32>
    %32 = arith.maximumf %30, %31 : vector<8x64xf32>
    %33 = arith.truncf %32 : vector<8x64xf32> to vector<8x64xbf16>
    %c0_24 = arith.constant 0 : index
    %c0_25 = arith.constant 0 : index
    %34 = vector.load %arg10[%c0_24, %c0_25] : memref<64x128xbf16, #tpu.memory_space<vmem>>, vector<64x128xbf16>
    %cst_26 = arith.constant dense<0.000000e+00> : vector<8x128xf32>
    %35 = tpu.matmul %33, %34, %cst_26 {dimension_numbers = #tpu.dot_dimension_numbers<[1], [0], [0], [1], [0, 0, 1, 1], [], []>} : vector<8x64xbf16>, vector<64x128xbf16>, vector<8x128xf32> -> vector<8x128xf32>
    %c0_27 = arith.constant 0 : index
    %c0_28 = arith.constant 0 : index
    %36 = vector.load %arg11[%c0_27, %c0_28] : memref<1x128xf32, #tpu.memory_space<vmem>>, vector<1x128xf32>
    %37 = vector.broadcast %36 : vector<1x128xf32> to vector<8x128xf32>
    %38 = arith.addf %35, %37 : vector<8x128xf32>
    %cst_29 = arith.constant dense<0xFF800000> : vector<8xf32>
    %39 = vector.multi_reduction <maximumf>, %38, %cst_29 [1] : vector<8x128xf32> to vector<8xf32>
    %40 = vector.shape_cast %39 : vector<8xf32> to vector<8x1xf32>
    %41 = vector.broadcast %40 : vector<8x1xf32> to vector<8x128xf32>
    %42 = arith.subf %38, %41 : vector<8x128xf32>
    %43 = math.exp %42 : vector<8x128xf32>
    %cst_30 = arith.constant dense<0.000000e+00> : vector<8xf32>
    %44 = vector.multi_reduction <add>, %43, %cst_30 [1] : vector<8x128xf32> to vector<8xf32>
    %45 = vector.shape_cast %44 : vector<8xf32> to vector<8x1xf32>
    %46 = tpu.reciprocal %45 {approx = true} : vector<8x1xf32> -> vector<8x1xf32>
    %47 = vector.broadcast %46 : vector<8x1xf32> to vector<8x128xf32>
    %48 = arith.mulf %43, %47 : vector<8x128xf32>
    %c0_31 = arith.constant 0 : index
    %c0_32 = arith.constant 0 : index
    %49 = vector.load %arg12[%c0_31, %c0_32] : memref<8x128xf32, #tpu.memory_space<vmem>>, vector<8x128xf32>
    tpu.vector_store %arg12[%c0_31, %c0_32], %48 {strides = array<i32>} : memref<8x128xf32, #tpu.memory_space<vmem>>, vector<8x128xf32>,
    return
  }
  func.func @transform_0(%arg0: i32) -> (i32, i32) {
    %c0_i32 = arith.constant 0 : i32
    %c0_i32_0 = arith.constant 0 : i32
    return %arg0, %c0_i32 : i32, i32
  }
  func.func @transform_1(%arg0: i32) -> (i32, i32) {
    %c0_i32 = arith.constant 0 : i32
    %c0_i32_0 = arith.constant 0 : i32
    %c0_i32_1 = arith.constant 0 : i32
    return %c0_i32, %c0_i32_0 : i32, i32
  }
  func.func @transform_2(%arg0: i32) -> (i32, i32) {
    %c0_i32 = arith.constant 0 : i32
    %c0_i32_0 = arith.constant 0 : i32
    %c0_i32_1 = arith.constant 0 : i32
    return %c0_i32, %c0_i32_0 : i32, i32
  }
  func.func @transform_3(%arg0: i32) -> (i32, i32) {
    %c0_i32 = arith.constant 0 : i32
    %c0_i32_0 = arith.constant 0 : i32
    %c0_i32_1 = arith.constant 0 : i32
    return %c0_i32, %c0_i32_0 : i32, i32
  }
  func.func @transform_4(%arg0: i32) -> (i32, i32) {
    %c0_i32 = arith.constant 0 : i32
    %c0_i32_0 = arith.constant 0 : i32
    %c0_i32_1 = arith.constant 0 : i32
    return %c0_i32, %c0_i32_0 : i32, i32
  }
  func.func @transform_5(%arg0: i32) -> (i32, i32) {
    %c0_i32 = arith.constant 0 : i32
    %c0_i32_0 = arith.constant 0 : i32
    %c0_i32_1 = arith.constant 0 : i32
    return %c0_i32, %c0_i32_0 : i32, i32
  }
  func.func @transform_6(%arg0: i32) -> (i32, i32) {
    %c0_i32 = arith.constant 0 : i32
    %c0_i32_0 = arith.constant 0 : i32
    %c0_i32_1 = arith.constant 0 : i32
    return %c0_i32, %c0_i32_0 : i32, i32
  }
  func.func @transform_7(%arg0: i32) -> (i32, i32) {
    %c0_i32 = arith.constant 0 : i32
    %c0_i32_0 = arith.constant 0 : i32
    %c0_i32_1 = arith.constant 0 : i32
    return %c0_i32, %c0_i32_0 : i32, i32
  }
  func.func @transform_8(%arg0: i32) -> (i32, i32) {
    %c0_i32 = arith.constant 0 : i32
    %c0_i32_0 = arith.constant 0 : i32
    %c0_i32_1 = arith.constant 0 : i32
    return %c0_i32, %c0_i32_0 : i32, i32
  }
  func.func @transform_9(%arg0: i32) -> (i32, i32) {
    %c0_i32 = arith.constant 0 : i32
    %c0_i32_0 = arith.constant 0 : i32
    %c0_i32_1 = arith.constant 0 : i32
    return %c0_i32, %c0_i32_0 : i32, i32
  }
  func.func @transform_10(%arg0: i32) -> (i32, i32) {
    %c0_i32 = arith.constant 0 : i32
    %c0_i32_0 = arith.constant 0 : i32
    %c0_i32_1 = arith.constant 0 : i32
    return %c0_i32, %c0_i32_0 : i32, i32
  }
  func.func @transform_11(%arg0: i32) -> (i32, i32) {
    %c0_i32 = arith.constant 0 : i32
    %c0_i32_0 = arith.constant 0 : i32
    return %arg0, %c0_i32 : i32, i32
  }
}

</mosaic_0001>

<bundles_post_ra>
// kernel: module2_forward.1
= control target key start
LH: loop header
LB: loop body
LE: loop exit
PB: predicated region body
PF: predicated region fallthrough
CT: control target
= control target key end

     0   :  { %16 = vsyncpa [#allocation3], 0  ;;  %s1770_s0 = inlined_call_operand.hbm [shape: f32[8,32], index: 0, kind: input, shape index: {}]   ;;  %s1771_s1 = inlined_call_operand.vmem [shape: bf16[32,512], index: 1, kind: input, shape index: {}]   ;;  %s1772_s2 = inlined_call_operand.vmem [shape: f32[1,512], index: 2, kind: input, shape index: {}]   ;;  %s1773_s3 = inlined_call_operand.hbm [shape: bf16[512,256], index: 3, kind: input, shape index: {}]   ;;  %s1774_s4 = inlined_call_operand.vmem [shape: f32[1,256], index: 4, kind: input, shape index: {}]   ;;  %s1775_s5 = inlined_call_operand.hbm [shape: bf16[256,128], index: 5, kind: input, shape index: {}]   ;;  %s1776_s6 = inlined_call_operand.vmem [shape: f32[1,128], index: 6, kind: input, shape index: {}]   ;;  %s1777_s7 = inlined_call_operand.vmem [shape: bf16[128,64], index: 7, kind: input, shape index: {}]   ;;  %s1778_s8 = inlined_call_operand.vmem [shape: f32[1,64], index: 8, kind: input, shape index: {}]   ;;  %s1779_s9 = inlined_call_operand.vmem [shape: bf16[64,128], index: 9, kind: input, shape index: {}]   ;;  %s1780_s10 = inlined_call_operand.vmem [shape: f32[1,128], index: 10, kind: input, shape index: {}]   ;;  %s1781_s11 = inlined_call_operand.hbm [shape: f32[8,128], index: 11, kind: output, shape index: {}]  }
   0x1   :  { %17 = vsyncpa [#allocation6], 0 }
   0x2   :  { %18 = vsyncpa [#allocation4], 0  ;;  %s1551_s17 = smov [#allocation5]   ;;  %s1457_s21 = scalar_lea.hbm %s1773_s3, 8192 }
   0x3   :  { %s38_s18 = sshll.u32 %s1551_s17, 4  ;;  %p1458_p0 = scmp.ne.s32.totalorder %s1773_s3, %s1457_s21  ;;  %s39_s18 = int_to_ptr.vmem [resolvable:$true] %s38_s18 }
   0x4   :  { %p1461_p1 = scmp.lt.u32.totalorder %s1457_s21, %s1773_s3 }
   0x6   :  { %p1463_p2 = pnand %p1461_p1, %p1458_p0 }
   0x8   :  { %1466 = shalt.err (!%p1463_p2)
}
   0x9   :  { %s1467_s26 = scalar_lea.vmem %s39_s18, 8192  ;;  %p1472_p4 = scmp.lt.s32.totalorder %s39_s18, %s39_s18 }
   0xa   :  { %p1468_p3 = scmp.ne.s32.totalorder %s39_s18, %s1467_s26  ;;  %p1473_p5 = scmp.lt.s32.totalorder %s1467_s26, %s1467_s26 }
   0xc   :  { %p1474_p6 = por %p1473_p5, %p1472_p4 }
   0xe   :  { %p1475_p7 = pnand %p1474_p6, %p1468_p3 }
  0x10   :  { %1478 = shalt.err (!%p1475_p7)
}
  0x11   :  { %s1552_s27 = smov 128   ;;  %s1553_s28 = smov 8  }
  0x12   :  { %44 = dma.hbm_to_vmem [thread:$0]  %s1773_s3, 8192, %s39_s18, [#allocation6], %s1552_s27, %s1552_s27, %s1553_s28  }
  0x13   :  { %s1554_s12 = smov [#allocation2]   ;;  %s1555_s14 = smov [#allocation7]  }
  0x14   :  { %s25_s13 = sshll.u32 %s1554_s12, 4  ;;  %s52_s15 = sshll.u32 %s1555_s14, 4  ;;  %s26_s13 = int_to_ptr.vmem [resolvable:$true] %s25_s13  ;;  %s53_s15 = int_to_ptr.vmem [resolvable:$true] %s52_s15 }
  0x15   :  { %s1479_s19 = scalar_lea.hbm %s1770_s0, 128 }
  0x16   :  { %p1480_p8 = scmp.ne.s32.totalorder %s1770_s0, %s1479_s19  ;;  %p1483_p9 = scmp.lt.u32.totalorder %s1479_s19, %s1770_s0 }
  0x18   :  { %p1485_p10 = pnand %p1483_p9, %p1480_p8 }
  0x1a   :  { %1488 = shalt.err (!%p1485_p10)
}
  0x1b   :  { %s1489_s3 = scalar_lea.vmem %s26_s13, 128  ;;  %p1494_p12 = scmp.lt.s32.totalorder %s26_s13, %s26_s13 }
  0x1c   :  { %p1490_p11 = scmp.ne.s32.totalorder %s26_s13, %s1489_s3  ;;  %p1495_p13 = scmp.lt.s32.totalorder %s1489_s3, %s1489_s3 }
  0x1e   :  { %p1496_p0 = por %p1495_p13, %p1494_p12 }
  0x20   :  { %p1497_p1 = pnand %p1496_p0, %p1490_p11 }
  0x22   :  { %1500 = shalt.err (!%p1497_p1)
}
  0x23   :  { %28 = dma.hbm_to_vmem [thread:$0]  %s1770_s0, 128, %s26_s13, [#allocation3]  }
  0x24   :  { %s1501_s27 = scalar_lea.hbm %s1775_s5, 2048 }
  0x25   :  { %p1502_p2 = scmp.ne.s32.totalorder %s1775_s5, %s1501_s27  ;;  %p1505_p3 = scmp.lt.u32.totalorder %s1501_s27, %s1775_s5 }
  0x27   :  { %p1507_p4 = pnand %p1505_p3, %p1502_p2 }
  0x29   :  { %1510 = shalt.err (!%p1507_p4)
}
  0x2a   :  { %s1511_s14 = scalar_lea.vmem %s53_s15, 2048  ;;  %p1516_p6 = scmp.lt.s32.totalorder %s53_s15, %s53_s15 }
  0x2b   :  { %p1512_p5 = scmp.ne.s32.totalorder %s53_s15, %s1511_s14  ;;  %p1517_p7 = scmp.lt.s32.totalorder %s1511_s14, %s1511_s14 }
  0x2d   :  { %p1518_p8 = por %p1517_p7, %p1516_p6 }
  0x2f   :  { %p1519_p9 = pnand %p1518_p8, %p1512_p5 }
  0x31   :  { %1522 = shalt.err (!%p1519_p9)
}
  0x32   :  { %s1556_s0 = smov 64   ;;  %s1557_s13 = smov 4  }
  0x33   :  { %58 = dma.hbm_to_vmem [thread:$0]  %s1775_s5, 2048, %s53_s15, [#allocation6], %s1556_s0, %s1556_s0, %s1557_s13  }
  0x34   :  { %1545 = dma.done.wait [#allocation3], 128  }
  0x35   :  { %1546 = vsyncadd [#allocation3], 4294967168 }
  0x36   :  { %1547 = dma.done.wait [#allocation6], 10240  }
  0x37   :  { %1548 = vsyncadd [#allocation6], 4294957056  ;;  %v1558_v0 = vmov 0   ;;  %v1317_v1 = vld [vmem:[%s1771_s1 + $0x4] ss:$16 sps:$4 sm:$0xff]   ;;  %vm151_vm0 = vcmask 261120   ;;  %v91_v56 = vlaneseq }
  0x38   :  { %187 = vmatprep.mubr.bf16.mxu1 %v1558_v0  ;;  %v1319_v2 = vld [vmem:[%s1771_s1] ss:$16 sps:$4 sm:$0xff]   ;;  %155 = vmatprep.subr.bf16.mxu1 %v1317_v1  ;;  %v1320_v3 = vld [vmem:[%s1771_s1 + $0x24] ss:$16 sps:$4 sm:$0xff]   ;;  %v1325_v6 = vld [vmem:[%s1771_s1 + $0xc] ss:$16 sps:$4 sm:$0xff]  }
  0x39   :  { %v1322_v4 = vld [vmem:[%s1771_s1 + $0x20] ss:$16 sps:$4 sm:$0xff]   ;;  %156 = vmatpush1.bf16.msra.mxu1 %v1319_v2  ;;  %v1323_v7 = vld [vmem:[%s1771_s1 + $0x8] ss:$16 sps:$4 sm:$0xff]   ;;  %v1329_v9 = vld [vmem:[#allocation5 + $0x4] ss:$8 sps:$4 sm:$0xff]  }
  0x3a   :  { %v79_v5 = vld [vmem:[#allocation2] sm:$0xff]  ;;  %157 = vmatprep.subr.bf16.mxu1 %v1320_v3  ;;  %v1331_v10 = vld [vmem:[#allocation5] ss:$8 sps:$4 sm:$0xff]   ;;  %v1328_v12 = vld [vmem:[%s1771_s1 + $0x2c] ss:$16 sps:$4 sm:$0xff]   ;;  %641 = vmatprep.subr.bf16.mxu0 %v1329_v9  ;;  %v1684_v57 = vshrl.u32 %v91_v56, 7 }
  0x3b   :  { %v80_v8 = vpack.c.bf16 %v79_v5, %v79_v5  ;;  %v1332_v11 = vld [vmem:[#allocation5 + $0x14] ss:$8 sps:$4 sm:$0xff]   ;;  %642 = vmatpush1.bf16.msra.mxu0 %v1331_v10  ;;  %v1334_v13 = vld [vmem:[#allocation5 + $0x10] ss:$8 sps:$4 sm:$0xff]   ;;  %v1335_v14 = vld [vmem:[#allocation5 + $0x24] ss:$8 sps:$4 sm:$0xff]  }
  0x3c   :  { %643 = vmatprep.subr.bf16.mxu0 %v1332_v11  ;;  %v1326_v15 = vld [vmem:[%s1771_s1 + $0x28] ss:$16 sps:$4 sm:$0xff]   ;;  %v1338_v17 = vld [vmem:[#allocation5 + $0x34] ss:$8 sps:$4 sm:$0xff]   ;;  %v1341_v19 = vld [vmem:[#allocation5 + $0x44] ss:$8 sps:$4 sm:$0xff]  }
  0x3d   :  { %158 = vmatpush1.bf16.msra.mxu1 %v1322_v4  ;;  %v1337_v16 = vld [vmem:[#allocation5 + $0x20] ss:$8 sps:$4 sm:$0xff]   ;;  %v1340_v18 = vld [vmem:[#allocation5 + $0x30] ss:$8 sps:$4 sm:$0xff]   ;;  %v1344_v21 = vld [vmem:[#allocation5 + $0x54] ss:$8 sps:$4 sm:$0xff]  }
  0x3e   :  { %196 = vmatprep.subr.bf16.mxu1 %v1325_v6  ;;  %v1343_v20 = vld [vmem:[#allocation5 + $0x40] ss:$8 sps:$4 sm:$0xff]   ;;  %v1346_v22 = vld [vmem:[#allocation5 + $0x50] ss:$8 sps:$4 sm:$0xff]   ;;  %v1347_v23 = vld [vmem:[#allocation5 + $0x64] ss:$8 sps:$4 sm:$0xff]  }
  0x3f   :  { %644 = vmatpush1.bf16.msra.mxu0 %v1334_v13  ;;  %v1349_v24 = vld [vmem:[#allocation5 + $0x60] ss:$8 sps:$4 sm:$0xff]   ;;  %v1350_v25 = vld [vmem:[#allocation5 + $0x74] ss:$8 sps:$4 sm:$0xff]   ;;  %v1352_v26 = vld [vmem:[#allocation5 + $0x70] ss:$8 sps:$4 sm:$0xff]  }
  0x40   :  { %1134 = vmatmul.mubr.msk.bf16.vlgmr.msra.gmra.mrb[0].mxu1 %vm151_vm0, %v80_v8  ;;  %645 = vmatprep.subr.bf16.mxu0 %v1335_v14  ;;  %v1353_v27 = vld [vmem:[#allocation5 + $0x84] ss:$8 sps:$4 sm:$0xff]   ;;  %v1355_v28 = vld [vmem:[#allocation5 + $0x80] ss:$8 sps:$4 sm:$0xff]   ;;  %v1356_v29 = vld [vmem:[#allocation5 + $0x94] ss:$8 sps:$4 sm:$0xff]  }
  0x41   :  { %197 = vmatpush1.bf16.msra.mxu1 %v1323_v7  ;;  %228 = vmatprep.mubr.bf16.mxu1 %v1558_v0  ;;  %v1358_v30 = vld [vmem:[#allocation5 + $0x90] ss:$8 sps:$4 sm:$0xff]   ;;  %v1359_v31 = vld [vmem:[#allocation5 + $0xa4] ss:$8 sps:$4 sm:$0xff]   ;;  %v1361_v32 = vld [vmem:[#allocation5 + $0xa0] ss:$8 sps:$4 sm:$0xff]  }
  0x42   :  { %198 = vmatprep.subr.bf16.mxu1 %v1328_v12  ;;  %v1362_v33 = vld [vmem:[#allocation5 + $0xb4] ss:$8 sps:$4 sm:$0xff]   ;;  %v1364_v34 = vld [vmem:[#allocation5 + $0xb0] ss:$8 sps:$4 sm:$0xff]   ;;  %v1365_v35 = vld [vmem:[#allocation5 + $0xc4] ss:$8 sps:$4 sm:$0xff]  }
  0x43   :  { %646 = vmatpush1.bf16.msra.mxu0 %v1337_v16  ;;  %v1367_v36 = vld [vmem:[#allocation5 + $0xc0] ss:$8 sps:$4 sm:$0xff]   ;;  %v1368_v37 = vld [vmem:[#allocation5 + $0xd4] ss:$8 sps:$4 sm:$0xff]   ;;  %v1370_v38 = vld [vmem:[#allocation5 + $0xd0] ss:$8 sps:$4 sm:$0xff]  }
  0x44   :  { %647 = vmatprep.subr.bf16.mxu0 %v1338_v17  ;;  %v1371_v39 = vld [vmem:[#allocation5 + $0xe4] ss:$8 sps:$4 sm:$0xff]   ;;  %v1373_v40 = vld [vmem:[#allocation5 + $0xe0] ss:$8 sps:$4 sm:$0xff]   ;;  %v1374_v41 = vld [vmem:[#allocation5 + $0xf4] ss:$8 sps:$4 sm:$0xff]  }
  0x45   :  { %199 = vmatpush1.bf16.msra.mxu1 %v1326_v15  ;;  %v1376_v42 = vld [vmem:[#allocation5 + $0xf0] ss:$8 sps:$4 sm:$0xff]   ;;  %v1379_v43 = vld [vmem:[#allocation5 + $0x104] ss:$8 sps:$4 sm:$0xff]   ;;  %v93_v58 = vsub.s32 0, %v1684_v57  ;;  %v97_v60 = vsub.s32 1, %v1684_v57 }
  0x46   :  { %v1425_v44 = vld [vmem:[#allocation7 + $0x40] sm:$0xff]   ;;  %v1427_v46 = vld [vmem:[#allocation7 + $0x48] sm:$0xff]   ;;  %v1429_v48 = vld [vmem:[#allocation7 + $0x50] sm:$0xff]   ;;  %v105_v4 = vsub.s32 3, %v1684_v57  ;;  %vm1560_vm1 = vmmov 0   ;;  %vm1056_vm2 = vcmask 523264  }
  0x47   :  { %648 = vmatpush1.bf16.msra.mxu0 %v1340_v18  ;;  %v1426_v45 = vld [vmem:[#allocation7] sm:$0xff]   ;;  %1232 = vmatprep.subr.bf16.mxu1 %v1425_v44  ;;  %v1428_v47 = vld [vmem:[#allocation7 + $0x8] sm:$0xff]   ;;  %v1430_v49 = vld [vmem:[#allocation7 + $0x10] sm:$0xff]  }
  0x48   :  { %1135 = vmatmul.mubr.msk.bf16.vlgmr.msra.gmra.mrb[4].mxu1 %vm151_vm0, %v80_v8  ;;  %649 = vmatprep.subr.bf16.mxu0 %v1341_v19  ;;  %v1431_v50 = vld [vmem:[#allocation7 + $0x58] sm:$0xff]   ;;  %v1433_v52 = vld [vmem:[#allocation7 + $0x60] sm:$0xff]   ;;  %v1435_v54 = vld [vmem:[#allocation7 + $0x68] sm:$0xff]  }
  0x49   :  { %1233 = vmatpush3.bf16.msra.mxu1 %v1426_v45  ;;  %v1432_v51 = vld [vmem:[#allocation7 + $0x18] sm:$0xff]   ;;  %v1434_v53 = vld [vmem:[#allocation7 + $0x20] sm:$0xff]   ;;  %v1436_v55 = vld [vmem:[#allocation7 + $0x28] sm:$0xff]  }
  0x4a   :  { %1234 = vmatprep.subr.bf16.mxu1 %v1427_v46  ;;  %v1690_v59 = vld [vmem:[%s1772_s2] sm:$0xf]  ;;  %v1377_v9 = vld [vmem:[#allocation5 + $0x100] ss:$8 sps:$4 sm:$0xff]   ;;  %v1382_v12 = vld [vmem:[#allocation5 + $0x114] ss:$8 sps:$4 sm:$0xff]  }
  0x4b   :  { %650 = vmatpush1.bf16.msra.mxu0 %v1343_v20  ;;  %v94_v61 = vrot.slane %v1690_v59, %v93_v58  ;;  %v98_v62 = vrot.slane %v1690_v59, %v97_v60  ;;  %v106_v10 = vrot.slane %v1690_v59, %v105_v4  ;;  %v1380_v15 = vld [vmem:[#allocation5 + $0x110] ss:$8 sps:$4 sm:$0xff]   ;;  %v1385_v18 = vld [vmem:[#allocation5 + $0x124] ss:$8 sps:$4 sm:$0xff]   ;;  %v1418_v44 = vld [vmem:[#allocation5 + $0x1d4] ss:$8 sps:$4 sm:$0xff]  }
  0x4c   :  { %651 = vmatprep.subr.bf16.mxu0 %v1344_v21  ;;  %v1383_v21 = vld [vmem:[#allocation5 + $0x120] ss:$8 sps:$4 sm:$0xff]   ;;  %v1416_v45 = vld [vmem:[#allocation5 + $0x1d0] ss:$8 sps:$4 sm:$0xff]  }
  0x4d   :  { %1235 = vmatpush3.bf16.msra.mxu1 %v1428_v47  ;;  %v1421_v47 = vld [vmem:[#allocation5 + $0x1e4] ss:$8 sps:$4 sm:$0xff]   ;;  %v1439_v56 = vld [vmem:[#allocation7 + $0x78] sm:$0xff]  }
  0x4e   :  { %1236 = vmatprep.subr.bf16.mxu1 %v1429_v48  ;;  %v1419_v48 = vld [vmem:[#allocation5 + $0x1e0] ss:$8 sps:$4 sm:$0xff]  }
  0x4f   :  { %652 = vmatpush1.bf16.msra.mxu0 %v1346_v22 }
  0x50   :  { %653 = vmatprep.subr.bf16.mxu0 %v1347_v23  ;;  %v1388_v23 = vld [vmem:[#allocation5 + $0x134] ss:$8 sps:$4 sm:$0xff]  }
  0x51   :  { %1237 = vmatpush3.bf16.msra.mxu1 %v1430_v49 }
  0x52   :  { %1238 = vmatprep.subr.bf16.mxu1 %v1431_v50  ;;  %v1424_v50 = vld [vmem:[#allocation5 + $0x1f4] ss:$8 sps:$4 sm:$0xff]  }
  0x53   :  { %654 = vmatpush1.bf16.msra.mxu0 %v1349_v24  ;;  %v1386_v24 = vld [vmem:[#allocation5 + $0x130] ss:$8 sps:$4 sm:$0xff]  }
  0x54   :  { %655 = vmatprep.subr.bf16.mxu0 %v1350_v25  ;;  %v1391_v25 = vld [vmem:[#allocation5 + $0x144] ss:$8 sps:$4 sm:$0xff]  }
  0x55   :  { %1239 = vmatpush3.bf16.msra.mxu1 %v1432_v51  ;;  %v1422_v51 = vld [vmem:[#allocation5 + $0x1f0] ss:$8 sps:$4 sm:$0xff]  }
  0x56   :  { %1240 = vmatprep.subr.bf16.mxu1 %v1433_v52 }
  0x57   :  { %656 = vmatpush1.bf16.msra.mxu0 %v1352_v26  ;;  %v1389_v26 = vld [vmem:[#allocation5 + $0x140] ss:$8 sps:$4 sm:$0xff]  }
  0x58   :  { %657 = vmatprep.subr.bf16.mxu0 %v1353_v27  ;;  %v1394_v27 = vld [vmem:[#allocation5 + $0x154] ss:$8 sps:$4 sm:$0xff]  }
  0x59   :  { %1241 = vmatpush3.bf16.msra.mxu1 %v1434_v53 }
  0x5a   :  { %1242 = vmatprep.subr.bf16.mxu1 %v1435_v54  ;;  %v1437_v54 = vld [vmem:[#allocation7 + $0x70] sm:$0xff]  }
  0x5b   :  { %658 = vmatpush1.bf16.msra.mxu0 %v1355_v28  ;;  %v1392_v28 = vld [vmem:[#allocation5 + $0x150] ss:$8 sps:$4 sm:$0xff]  }
  0x5c   :  { %659 = vmatprep.subr.bf16.mxu0 %v1356_v29  ;;  %v1397_v29 = vld [vmem:[#allocation5 + $0x164] ss:$8 sps:$4 sm:$0xff]  }
  0x5d   :  { %1243 = vmatpush3.bf16.msra.mxu1 %v1436_v55  ;;  %v1438_v55 = vld [vmem:[#allocation7 + $0x30] sm:$0xff]  }
  0x5e   :  { %1244 = vmatprep.subr.bf16.mxu1 %v1437_v54 }
  0x5f   :  { %660 = vmatpush1.bf16.msra.mxu0 %v1358_v30  ;;  %v1395_v30 = vld [vmem:[#allocation5 + $0x160] ss:$8 sps:$4 sm:$0xff]  }
  0x60   :  { %661 = vmatprep.subr.bf16.mxu0 %v1359_v31  ;;  %v1400_v31 = vld [vmem:[#allocation5 + $0x174] ss:$8 sps:$4 sm:$0xff]  }
  0x61   :  { %1245 = vmatpush3.bf16.msra.mxu1 %v1438_v55 }
  0x62   :  { %1246 = vmatprep.subr.bf16.mxu1 %v1439_v56 }
  0x63   :  { %662 = vmatpush1.bf16.msra.mxu0 %v1361_v32  ;;  %v1398_v32 = vld [vmem:[#allocation5 + $0x170] ss:$8 sps:$4 sm:$0xff]  }
  0x64   :  { %663 = vmatprep.subr.bf16.mxu0 %v1362_v33  ;;  %v1403_v33 = vld [vmem:[#allocation5 + $0x184] ss:$8 sps:$4 sm:$0xff]  }
  0x67   :  { %664 = vmatpush1.bf16.msra.mxu0 %v1364_v34  ;;  %v1401_v34 = vld [vmem:[#allocation5 + $0x180] ss:$8 sps:$4 sm:$0xff]  }
  0x68   :  { %665 = vmatprep.subr.bf16.mxu0 %v1365_v35  ;;  %v1406_v35 = vld [vmem:[#allocation5 + $0x194] ss:$8 sps:$4 sm:$0xff]  }
  0x6b   :  { %666 = vmatpush1.bf16.msra.mxu0 %v1367_v36  ;;  %v1404_v36 = vld [vmem:[#allocation5 + $0x190] ss:$8 sps:$4 sm:$0xff]  }
  0x6c   :  { %667 = vmatprep.subr.bf16.mxu0 %v1368_v37  ;;  %v1409_v37 = vld [vmem:[#allocation5 + $0x1a4] ss:$8 sps:$4 sm:$0xff]  }
  0x6f   :  { %668 = vmatpush1.bf16.msra.mxu0 %v1370_v38  ;;  %v1407_v38 = vld [vmem:[#allocation5 + $0x1a0] ss:$8 sps:$4 sm:$0xff]  }
  0x70   :  { %669 = vmatprep.subr.bf16.mxu0 %v1371_v39  ;;  %v1412_v39 = vld [vmem:[#allocation5 + $0x1b4] ss:$8 sps:$4 sm:$0xff]  }
  0x73   :  { %670 = vmatpush1.bf16.msra.mxu0 %v1373_v40  ;;  %v1410_v40 = vld [vmem:[#allocation5 + $0x1b0] ss:$8 sps:$4 sm:$0xff]  }
  0x74   :  { %671 = vmatprep.subr.bf16.mxu0 %v1374_v41  ;;  %v1415_v41 = vld [vmem:[#allocation5 + $0x1c4] ss:$8 sps:$4 sm:$0xff]  }
  0x77   :  { %672 = vmatpush1.bf16.msra.mxu0 %v1376_v42  ;;  %v1413_v42 = vld [vmem:[#allocation5 + $0x1c0] ss:$8 sps:$4 sm:$0xff]  }
  0x78   :  { %682 = vmatprep.subr.bf16.mxu0 %v1379_v43  ;;  %v101_v43 = vsub.s32 2, %v1684_v57  ;;  %v1442_v57 = vld [vmem:[%s1777_s7 + $0x8] sm:$0xff]  }
  0x7a   :  { %v102_v46 = vrot.slane %v1690_v59, %v101_v43  ;;  %v1440_v59 = vld [vmem:[#allocation7 + $0x38] sm:$0xff]  }
  0x7b   :  { %1247 = vmatpush3.bf16.msra.mxu1 %v1440_v59 }
 0x113   :  { %v189_v63 = vpop.f32.mrb[0].mxu1 }
 0x114   :  { %v190_v0 = vadd.f32 %v189_v63, %v94_v61  ;;  %v191_v1 = vpop.f32.mrb[1].mxu1  ;;  %v1559_v61 = vmov 0.0  }
 0x115   :  { %v192_v2 = vadd.f32 %v191_v1, %v98_v62  ;;  %v193_v3 = vpop.f32.mrb[2].mxu1  ;;  %1268 = vmatprep.subr.bf16.mxu1 %v1559_v61  ;;  %v309_v62 = vld [vmem:[%s1774_s4] sm:$0x3] }
 0x116   :  { %v237_v5 = vmax.f32 %v190_v0, 0.0  ;;  %v194_v6 = vpop.f32.mrb[3].mxu1  ;;  %v314_v63 = vrot.slane %v309_v62, %v93_v58  ;;  %v318_v0 = vrot.slane %v309_v62, %v97_v60  ;;  %v1443_v58 = vld [vmem:[%s1777_s7 + $0x10] sm:$0xff]   ;;  %v1444_v60 = vld [vmem:[%s1777_s7 + $0x18] sm:$0xff]  }
 0x117   :  { %v238_v7 = vmax.f32 %v192_v2, 0.0 }
 0x118   :  { %v241_v11 = vpack.c.bf16 %v237_v5, %v237_v5 }
 0x119   :  { %v242_v8 = vpack.c.bf16 %v238_v7, %v238_v7 }
 0x11b   :  { %673 = vmatprep.mubr.bf16.mxu0 %v242_v8  ;;  %v1701_v13 = vpop.f32.mrb[4].mxu1 }
 0x11c   :  { %674 = vmatmul.mubr.bf16.vlgmr.msra.gmra.mrb[0].mxu0 %v241_v11  ;;  %v232_v14 = vpop.f32.mrb[5].mxu1  ;;  %v231_v49 = vadd.f32 %v1701_v13, %v102_v46  ;;  %v1446_v13 = vld [vmem:[%s1777_s7 + $0x28] sm:$0xff]  }
 0x11d   :  { %683 = vmatpush1.bf16.msra.mxu0 %v1377_v9  ;;  %v233_v16 = vadd.f32 %v232_v14, %v106_v10  ;;  %v234_v17 = vpop.f32.mrb[6].mxu1  ;;  %v1441_v10 = vld [vmem:[%s1777_s7] sm:$0xff]   ;;  %v1447_v14 = vld [vmem:[%s1777_s7 + $0x30] sm:$0xff]  }
 0x11e   :  { %684 = vmatprep.subr.bf16.mxu0 %v1382_v12  ;;  %v235_v19 = vpop.f32.mrb[7].mxu1  ;;  %v239_v52 = vmax.f32 %v231_v49, 0.0  ;;  %v1445_v12 = vld [vmem:[%s1777_s7 + $0x20] sm:$0xff]  }
 0x11f   :  { %v240_v20 = vmax.f32 %v233_v16, 0.0  ;;  %v1200_v17 = vld [vmem:[%s1776_s6] ss:$0 sm:$0xff] }
 0x120   :  { %v243_v53 = vpack.c.bf16 %v239_v52, %v239_v52 }
 0x121   :  { %685 = vmatpush1.bf16.msra.mxu0 %v1380_v15  ;;  %v244_v22 = vpack.c.bf16 %v240_v20, %v240_v20  ;;  %v1448_v15 = vld [vmem:[%s1777_s7 + $0x38] sm:$0xff]  }
 0x122   :  { %686 = vmatprep.subr.bf16.mxu0 %v1385_v18 }
 0x123   :  { %714 = vmatprep.mubr.bf16.mxu0 %v244_v22 }
 0x125   :  { %687 = vmatpush1.bf16.msra.mxu0 %v1383_v21 }
 0x126   :  { %688 = vmatprep.subr.bf16.mxu0 %v1388_v23 }
 0x129   :  { %689 = vmatpush1.bf16.msra.mxu0 %v1386_v24  ;;  %v1449_v24 = vld [vmem:[%s1779_s9] sm:$0xff]  }
 0x12a   :  { %690 = vmatprep.subr.bf16.mxu0 %v1391_v25 }
 0x12d   :  { %691 = vmatpush1.bf16.msra.mxu0 %v1389_v26  ;;  %v1450_v26 = vld [vmem:[%s1779_s9 + $0x8] sm:$0xff]  }
 0x12e   :  { %692 = vmatprep.subr.bf16.mxu0 %v1394_v27  ;;  %v1451_v27 = vld [vmem:[%s1779_s9 + $0x10] sm:$0xff]  }
 0x131   :  { %693 = vmatpush1.bf16.msra.mxu0 %v1392_v28  ;;  %v1452_v28 = vld [vmem:[%s1779_s9 + $0x18] sm:$0xff]  }
 0x132   :  { %694 = vmatprep.subr.bf16.mxu0 %v1397_v29  ;;  %v1217_v29 = vld [vmem:[%s1778_s8] ss:$0 sm:$0xff]  ;;  %s1561_s8 = smov [#allocation8]  }
 0x133   :  { %s1116_s9 = sshll.u32 %s1561_s8, 4  ;;  %s1117_s9 = int_to_ptr.vmem [resolvable:$true] %s1116_s9 }
 0x134   :  { %p1528_p11 = scmp.lt.s32.totalorder %s1117_s9, %s1117_s9 }
 0x135   :  { %695 = vmatpush1.bf16.msra.mxu0 %v1395_v30 }
 0x136   :  { %696 = vmatprep.subr.bf16.mxu0 %v1400_v31 }
 0x139   :  { %697 = vmatpush1.bf16.msra.mxu0 %v1398_v32 }
 0x13a   :  { %698 = vmatprep.subr.bf16.mxu0 %v1403_v33 }
 0x13d   :  { %699 = vmatpush1.bf16.msra.mxu0 %v1401_v34 }
 0x13e   :  { %700 = vmatprep.subr.bf16.mxu0 %v1406_v35 }
 0x141   :  { %701 = vmatpush1.bf16.msra.mxu0 %v1404_v36 }
 0x142   :  { %702 = vmatprep.subr.bf16.mxu0 %v1409_v37  ;;  %v1226_v37 = vld [vmem:[%s1780_s10] ss:$0 sm:$0xff]  ;;  %s1523_s10 = scalar_lea.vmem %s1117_s9, 128 }
 0x143   :  { %p1524_p10 = scmp.ne.s32.totalorder %s1117_s9, %s1523_s10  ;;  %p1529_p12 = scmp.lt.s32.totalorder %s1523_s10, %s1523_s10 }
 0x145   :  { %703 = vmatpush1.bf16.msra.mxu0 %v1407_v38  ;;  %p1530_p13 = por %p1529_p12, %p1528_p11 }
 0x146   :  { %704 = vmatprep.subr.bf16.mxu0 %v1412_v39 }
 0x147   :  { %p1531_p0 = pnand %p1530_p13, %p1524_p10 }
 0x149   :  { %705 = vmatpush1.bf16.msra.mxu0 %v1410_v40 }
 0x14a   :  { %706 = vmatprep.subr.bf16.mxu0 %v1415_v41 }
 0x14d   :  { %707 = vmatpush1.bf16.msra.mxu0 %v1413_v42 }
 0x14e   :  { %708 = vmatprep.subr.bf16.mxu0 %v1418_v44 }
 0x151   :  { %709 = vmatpush1.bf16.msra.mxu0 %v1416_v45 }
 0x152   :  { %710 = vmatprep.subr.bf16.mxu0 %v1421_v47 }
 0x155   :  { %711 = vmatpush1.bf16.msra.mxu0 %v1419_v48 }
 0x156   :  { %712 = vmatprep.subr.bf16.mxu0 %v1424_v50 }
 0x159   :  { %713 = vmatpush1.bf16.msra.mxu0 %v1422_v51 }
 0x15c   :  { %715 = vmatmul.mubr.bf16.vlgmr.msra.gmra.mrb[0].mxu0 %v243_v53 }
 0x22f   :  { %v716_v1 = vpop.f32.mrb[0].mxu0 }
 0x230   :  { %v1300_v2 = vadd.f32 %v716_v1, %v314_v63  ;;  %v718_v3 = vpop.f32.mrb[1].mxu0 }
 0x231   :  { %v1301_v4 = vadd.f32 %v718_v3, %v318_v0  ;;  %v720_v5 = vpop.f32.mrb[2].mxu0 }
 0x232   :  { %v723_v6 = vmax.f32 %v1300_v2, 0.0  ;;  %v721_v7 = vpop.f32.mrb[3].mxu0 }
 0x233   :  { %v724_v8 = vmax.f32 %v1301_v4, 0.0 }
 0x234   :  { %v725_v11 = vpack.c.bf16 %v723_v6, %v723_v6 }
 0x235   :  { %v726_v9 = vpack.c.bf16 %v724_v8, %v724_v8 }
 0x237   :  { %894 = vmatprep.mubr.bf16.mxu1 %v726_v9 }
 0x238   :  { %895 = vmatmul.mubr.bf16.vlgmr.msra.gmra.mrb[8].mxu1 %v725_v11 }
 0x239   :  { %1269 = vmatpush3.bf16.msra.mxu1 %v1441_v10  ;;  %1284 = vmatprep.mubr.msk.bf16.mxu1 %vm1560_vm1, %v1559_v61 }
 0x23a   :  { %1270 = vmatprep.subr.bf16.mxu1 %v1559_v61 }
 0x23d   :  { %1271 = vmatpush3.bf16.msra.mxu1 %v1442_v57 }
 0x23e   :  { %1272 = vmatprep.subr.bf16.mxu1 %v1559_v61 }
 0x241   :  { %1273 = vmatpush3.bf16.msra.mxu1 %v1443_v58 }
 0x242   :  { %1274 = vmatprep.subr.bf16.mxu1 %v1559_v61 }
 0x245   :  { %1275 = vmatpush3.bf16.msra.mxu1 %v1444_v60 }
 0x246   :  { %1276 = vmatprep.subr.bf16.mxu1 %v1559_v61 }
 0x249   :  { %1277 = vmatpush3.bf16.msra.mxu1 %v1445_v12 }
 0x24a   :  { %1278 = vmatprep.subr.bf16.mxu1 %v1559_v61 }
 0x24d   :  { %1279 = vmatpush3.bf16.msra.mxu1 %v1446_v13 }
 0x24e   :  { %1280 = vmatprep.subr.bf16.mxu1 %v1559_v61 }
 0x251   :  { %1281 = vmatpush3.bf16.msra.mxu1 %v1447_v14 }
 0x252   :  { %1282 = vmatprep.subr.bf16.mxu1 %v1559_v61 }
 0x255   :  { %1283 = vmatpush3.bf16.msra.mxu1 %v1448_v15 }
 0x256   :  { %1288 = vmatprep.subr.bf16.mxu1 %v1559_v61 }
 0x30b   :  { %v1248_v16 = vpop.f32.mrb[8].mxu1 }
 0x30c   :  { %v1249_v18 = vpop.f32.mrb[9].mxu1 }
 0x30d   :  { %v1250_v19 = vadd.f32 %v1249_v18, %v1248_v16  ;;  %v1251_v20 = vpop.f32.mrb[10].mxu1 }
 0x30e   :  { %v1252_v21 = vpop.f32.mrb[11].mxu1 }
 0x30f   :  { %v897_v22 = vadd.f32 %v1250_v19, %v1200_v17 }
 0x311   :  { %v902_v23 = vmax.f32 %v897_v22, 0.0 }
 0x313   :  { %v903_v25 = vpack.c.bf16 %v902_v23, %v902_v23 }
 0x315   :  { %1285 = vmatmul.mubr.bf16.vlgmr.msra.gmra.mrb[12].mxu1 %v903_v25 }
 0x316   :  { %1289 = vmatpush3.bf16.msra.mxu1 %v1449_v24  ;;  %1296 = vmatprep.mubr.msk.bf16.mxu1 %vm1560_vm1, %v1559_v61 }
 0x317   :  { %1290 = vmatprep.subr.bf16.mxu1 %v1559_v61 }
 0x31a   :  { %1291 = vmatpush3.bf16.msra.mxu1 %v1450_v26 }
 0x31b   :  { %1292 = vmatprep.subr.bf16.mxu1 %v1559_v61 }
 0x31e   :  { %1293 = vmatpush3.bf16.msra.mxu1 %v1451_v27 }
 0x31f   :  { %1294 = vmatprep.subr.bf16.mxu1 %v1559_v61 }
 0x322   :  { %1295 = vmatpush3.bf16.msra.mxu1 %v1452_v28 }
 0x3e8   :  { %v1009_v30 = vpop.f32.mrb[12].mxu1 }
 0x3e9   :  { %v1010_v31 = vadd.f32 %v1217_v29, %v1009_v30  ;;  %v1286_v32 = vpop.f32.mrb[13].mxu1 }
 0x3ea   :  { %v1012_v33 = vpop.f32.mrb[14].mxu1 }
 0x3eb   :  { %v1015_v34 = vmax.f32 %v1010_v31, 0.0  ;;  %v1287_v35 = vpop.f32.mrb[15].mxu1 }
 0x3ed   :  { %v1016_v36 = vpack.c.bf16 %v1015_v34, %v1015_v34 }
 0x3ef   :  { %1297 = vmatmul.mubr.msk.bf16.vlgmr.msra.gmra.mrb[16].mxu1 %vm1056_vm2, %v1016_v36 }
 0x4c2   :  { %v1094_v38 = vpop.f32.mrb[16].mxu1 }
 0x4c3   :  { %v1095_v39 = vadd.f32 %v1226_v37, %v1094_v38  ;;  %v1298_v40 = vpop.f32.mrb[17].mxu1 }
 0x4c4   :  { %v1097_v41 = vpop.f32.mrb[18].mxu1 }
 0x4c5   :  { %1100 = vmax.xlane.f32.xlu0 %v1095_v39  ;;  %v1299_v42 = vpop.f32.mrb[19].mxu1 }
 0x552   :  { %v1101_v43 = vpop.xlane.xlu0 %1100 }
 0x553   :  { %v1102_v44 = vsub.f32 %v1095_v39, %v1101_v43 }
 0x555   :  { %v1103_v45 = vmul.f32 1.442695, %v1102_v44 }
 0x557   :  { %1453 = vpow2.f32 %v1103_v45 }
 0x561   :  { %v1454_v46 = vpop.eup %1453 }
 0x562   :  { %1105 = vadd.xlane.f32.xlu0 %v1454_v46 }
 0x5ef   :  { %v1106_v47 = vpop.xlane.xlu0 %1105 }
 0x5f0   :  { %1455 = vrcp.f32 %v1106_v47 }
 0x5fa   :  { %v1456_v48 = vpop.eup %1455 }
 0x5fb   :  { %v1108_v49 = vmul.f32 %v1456_v48, %v1454_v46 }
 0x5fd   :  { %1109 = vst [vmem:[#allocation8] sm:$0xff] %v1108_v49 }
 0x5fe   :  { %1534 = shalt.err (!%p1531_p0)
}
 0x5ff   :  { %s1535_s19 = scalar_lea.hbm %s1781_s11, 128 }
 0x600   :  { %p1536_p1 = scmp.ne.s32.totalorder %s1781_s11, %s1535_s19  ;;  %p1539_p2 = scmp.lt.u32.totalorder %s1535_s19, %s1781_s11 }
 0x602   :  { %p1541_p3 = pnand %p1539_p2, %p1536_p1 }
 0x604   :  { %1544 = shalt.err (!%p1541_p3)
}
 0x605   :  { %1119 = dma.vmem_to_hbm [thread:$0]  %s1117_s9, 128, %s1781_s11, [#allocation4]  }
 0x606   :  { %1549 = dma.done.wait [#allocation4], 128  }
 0x607   :  { %1550 = vsyncadd [#allocation4], 4294967168 }
 0x608   :  { %1123 = vsyncpa [#allocation3], 1 }
 0x609   :  { %1124 = vsyncpa [#allocation6], 1 }
 0x60a   :  { %1125 = vsyncpa [#allocation4], 1 }

</bundles_post_ra>
